<compile_context>
chip_gen: v7x
topology: tpu7x:2x2x1
jax: 0.10.0
libtpu: 0.0.40
codegen_flags: <defaults>
</compile_context>

<pallas_src>
import functools

import jax
import jax.numpy as jnp
from jax import lax
from jax.experimental import pallas as pl
from jax.experimental.pallas import tpu as pltpu


# ----------------------------------------------------------------------------
# Kernel bodies
# ----------------------------------------------------------------------------
def _softmax_rows_f32(scores):
    """Row softmax in f32; returns probabilities in f32."""
    scores = scores - jnp.max(scores, axis=-1, keepdims=True)
    e = jnp.exp(scores)
    denom = jnp.sum(e, axis=-1, keepdims=True)
    # EUP approximate reciprocal (otherwise-idle slot) + one Newton-Raphson
    # step on the (TQ, 1) vector restores full f32 accuracy.
    r = pl.reciprocal(denom, approx=True)
    r = r * (2.0 - denom * r)
    return e * r


def _sdpa_kernel_nomask(q_ref, k_ref, v_ref, o_ref, a_ref, *, inv_temp):
    q = q_ref[0]                              # (TQ, Dk), input dtype
    k = k_ref[0]                              # (Lk, Dk), input dtype
    v = v_ref[0]                              # (Lk, Dv), input dtype

    # Contract last dim of q with last dim of k -> no k transpose/relayout.
    scores = lax.dot_general(
        q, k, dimension_numbers=(((1,), (1,)), ((), ())),
        preferred_element_type=jnp.float32)   # (TQ, Lk) f32
    # Scale in f32 on the score tile: exact reference numerics for any dtype.
    scores = scores * jnp.float32(inv_temp)

    attn = _softmax_rows_f32(scores)

    # Single cast: reuse the stored-dtype attn for the PV matmul when possible.
    attn_lp = attn.astype(a_ref.dtype)
    a_ref[0] = attn_lp
    pv = attn_lp if a_ref.dtype == v.dtype else attn.astype(v.dtype)

    out = jnp.dot(pv, v, preferred_element_type=jnp.float32)
    o_ref[0] = out.astype(o_ref.dtype)


def _sdpa_kernel_mask(q_ref, k_ref, v_ref, m_ref, o_ref, a_ref, *, inv_temp):
    q = q_ref[0]                              # (TQ, Dk)
    k = k_ref[0]                              # (Lk, Dk)
    v = v_ref[0]                              # (Lk, Dv)
    m = m_ref[0, 0]                           # (TQ, Lk), int8/bool/any

    scores = lax.dot_general(
        q, k, dimension_numbers=(((1,), (1,)), ((), ())),
        preferred_element_type=jnp.float32)
    scores = scores * jnp.float32(inv_temp)
    scores = jnp.where(m == 0, jnp.float32(-1e9), scores)   # masked_fill

    attn = _softmax_rows_f32(scores)

    attn_lp = attn.astype(a_ref.dtype)
    a_ref[0] = attn_lp
    pv = attn_lp if a_ref.dtype == v.dtype else attn.astype(v.dtype)

    out = jnp.dot(pv, v, preferred_element_type=jnp.float32)
    o_ref[0] = out.astype(o_ref.dtype)


# ----------------------------------------------------------------------------
# VMEM-aware configuration
# ----------------------------------------------------------------------------
def _vmem_capacity_bytes():
    """Physical VMEM per core; conservative fallbacks if the query fails."""
    try:
        return int(pltpu.get_tpu_info().vmem_capacity_bytes)
    except Exception:
        pass
    try:
        kind = jax.devices()[0].device_kind.lower()
        if "v7" in kind:
            return 64 * 1024 * 1024
        return 128 * 1024 * 1024
    except Exception:
        return 64 * 1024 * 1024


def _choose_q_tile(lq, lk, dk, dv, itemsizes, has_mask, mask_itemsize,
                   block_budget_bytes, kv_bufs):
    """Largest Lq tile dividing Lq whose pipelined VMEM footprint fits budget.

    Footprint = kv_bufs * K/V blocks (resident per head)
              + 2x (double-buffered) q / out / attn (/ mask) blocks
              + ~3 live (TQ, Lk) f32 softmax intermediates (scores, e, probs).
    """
    qis, kis, vis, ois, ais = itemsizes
    fixed = kv_bufs * lk * (dk * kis + dv * vis)
    per_row = (2 * dk * qis            # q block
               + 2 * dv * ois          # output block
               + 2 * lk * ais          # attn block
               + 3 * lk * 4)           # f32 softmax intermediates
    if has_mask:
        per_row += 2 * lk * mask_itemsize
    avail = max(block_budget_bytes - fixed, 0)
    max_rows = avail // per_row if per_row > 0 else lq

    candidates = [t for t in (1024, 512, 256, 128, 64, 32, 16, 8)
                  if t <= lq and lq % t == 0]
    if has_mask and mask_itemsize == 1:
        # int8 min tile is (32, 128): keep TQ a multiple of 32 when possible.
        c32 = [t for t in candidates if t % 32 == 0]
        if c32:
            candidates = c32
    for t in candidates:
        if t <= max_rows:
            return t
    # Nothing fits the budget (or Lq is tiny/odd): smallest legal divisor, or
    # the full extent.  May spill for extreme Lk -- see TODO on Lk tiling.
    return candidates[-1] if candidates else lq


def _block_spec(block_shape, index_map, buffer_count=None):
    """BlockSpec, optionally with an explicit pipeline buffer count."""
    if buffer_count is not None:
        try:
            return pl.BlockSpec(block_shape, index_map,
                                pipeline_mode=pl.Buffered(buffer_count))
        except TypeError:
            pass  # older API without pipeline_mode: fall back to default (2)
    return pl.BlockSpec(block_shape, index_map)


# ----------------------------------------------------------------------------
# Public wrapper
# ----------------------------------------------------------------------------
def scaled_dot_product_attention(q, k, v, temperature, mask=None,
                                 attn_dtype=None):
    """Pallas implementation of ScaledDotProductAttention.forward."""
    B, H, Lq, Dk = q.shape
    _, _, Lk, Dv = v.shape
    BH = B * H
    inv_temp = 1.0 / float(temperature)
    attn_dtype = jnp.dtype(q.dtype if attn_dtype is None else attn_dtype)

    # Per-generation VMEM budgets.
    vmem_cap = _vmem_capacity_bytes()
    small_vmem = vmem_cap <= 64 * 1024 * 1024          # v7x-class (64 MiB)
    if small_vmem:
        vmem_limit = 40 * 1024 * 1024
        block_budget = 28 * 1024 * 1024
    else:                                              # v5e / v6e (128 MiB)
        vmem_limit = 100 * 1024 * 1024
        block_budget = 80 * 1024 * 1024

    itemsizes = (q.dtype.itemsize, k.dtype.itemsize, v.dtype.itemsize,
                 q.dtype.itemsize, attn_dtype.itemsize)

    # K/V blocks change index once per head; on small-VMEM chips drop to
    # single-buffering when their double-buffered footprint is significant.
    kv_2buf = 2 * Lk * (Dk * k.dtype.itemsize + Dv * v.dtype.itemsize)
    kv_bufs = 1 if (small_vmem and kv_2buf > block_budget // 3) else 2

    mask_itemsize = mask.dtype.itemsize if mask is not None else 0
    TQ = _choose_q_tile(Lq, Lk, Dk, Dv, itemsizes, mask is not None,
                        mask_itemsize, block_budget, kv_bufs)
    n_q = Lq // TQ

    # Flatten (B, H) -> BH so one grid axis covers every head; the inner grid
    # axis tiles Lq, so the (Lk, D) K/V blocks are fetched once per head.
    q3 = q.reshape(BH, Lq, Dk)
    k3 = k.reshape(BH, Lk, Dk)
    v3 = v.reshape(BH, Lk, Dv)

    grid = (BH, n_q)
    kv_buffer_count = 1 if kv_bufs == 1 else None

    in_specs = [
        pl.BlockSpec((1, TQ, Dk), lambda bh, qi: (bh, qi, 0)),
        _block_spec((1, Lk, Dk), lambda bh, qi: (bh, 0, 0), kv_buffer_count),
        _block_spec((1, Lk, Dv), lambda bh, qi: (bh, 0, 0), kv_buffer_count),
    ]
    out_specs = [
        pl.BlockSpec((1, TQ, Dv), lambda bh, qi: (bh, qi, 0)),
        pl.BlockSpec((1, TQ, Lk), lambda bh, qi: (bh, qi, 0)),
    ]
    out_shapes = (
        jax.ShapeDtypeStruct((BH, Lq, Dv), q.dtype),        # output
        jax.ShapeDtypeStruct((BH, Lq, Lk), attn_dtype),     # attn
    )

    mask_bytes = 0
    if mask is None:
        kernel = functools.partial(_sdpa_kernel_nomask, inv_temp=inv_temp)
        args = (q3, k3, v3)
    else:
        kernel = functools.partial(_sdpa_kernel_mask, inv_temp=inv_temp)
        # mask is (B, 1, Lq, Lk): broadcast over heads via the index map.
        in_specs.append(
            pl.BlockSpec((1, 1, TQ, Lk), lambda bh, qi: (bh // H, 0, qi, 0)))
        args = (q3, k3, v3, mask)
        mask_bytes = mask.size * mask.dtype.itemsize

    cost = pl.CostEstimate(
        flops=2 * BH * Lq * Lk * (Dk + Dv),
        transcendentals=BH * Lq * Lk,
        bytes_accessed=(q.size * q.dtype.itemsize
                        + k.size * k.dtype.itemsize
                        + v.size * v.dtype.itemsize
                        + mask_bytes
                        + BH * Lq * Dv * q.dtype.itemsize
                        + BH * Lq * Lk * attn_dtype.itemsize),
    )

    out3, attn3 = pl.pallas_call(
        kernel,
        out_shape=out_shapes,
        grid_spec=pltpu.PrefetchScalarGridSpec(
            num_scalar_prefetch=0,
            grid=grid,
            in_specs=in_specs,
            out_specs=out_specs,
        ),
        compiler_params=pltpu.CompilerParams(
            # BH first + "arbitrary" qi: on v7x the 2-TC split shards heads,
            # so K/V is DMA'd once per head per core.
            dimension_semantics=("parallel", "arbitrary"),
            vmem_limit_bytes=vmem_limit,
        ),
        cost_estimate=cost,
    )(*args)

    return out3.reshape(B, H, Lq, Dv), attn3.reshape(B, H, Lq, Lk)


# ----------------------------------------------------------------------------
# Reference + self-test
# ----------------------------------------------------------------------------
def _reference(q, k, v, temperature, mask=None):
    attn = jnp.einsum("bhqd,bhkd->bhqk", q, k) / temperature
    if mask is not None:
        attn = jnp.where(mask == 0, -1e9, attn)
    attn = jax.nn.softmax(attn, axis=-1)
    out = jnp.einsum("bhqk,bhkd->bhqd", attn, v)
    return out, attn


if __name__ == "__main__":
    key = jax.random.PRNGKey(0)

    # ---- Test 1: small shapes (single padded tile per head), f32 ----------
    B, H, Lq, Lk, Dk, Dv = 2, 2, 8, 8, 32, 32
    temperature = float(Dk) ** 0.5
    kq, kk, kv, km, kq2, kk2, kv2, km2 = jax.random.split(key, 8)
    q = jax.random.normal(kq, (B, H, Lq, Dk), dtype=jnp.float32)
    k = jax.random.normal(kk, (B, H, Lk, Dk), dtype=jnp.float32)
    v = jax.random.normal(kv, (B, H, Lk, Dv), dtype=jnp.float32)
    mask = (jax.random.uniform(km, (B, 1, Lq, Lk)) > 0.2).astype(jnp.int8)

    out0, attn0 = scaled_dot_product_attention(q, k, v, temperature, mask=None)
    out0, attn0 = jax.block_until_ready((out0, attn0))
    ref_out0, ref_attn0 = _reference(q, k, v, temperature, mask=None)
    assert jnp.allclose(out0, ref_out0, atol=1e-4, rtol=1e-4)
    assert jnp.allclose(attn0, ref_attn0, atol=1e-4, rtol=1e-4)

    out1, attn1 = scaled_dot_product_attention(q, k, v, temperature, mask=mask)
    out1, attn1 = jax.block_until_ready((out1, attn1))
    ref_out1, ref_attn1 = _reference(q, k, v, temperature, mask=mask)
    assert jnp.allclose(out1, ref_out1, atol=1e-4, rtol=1e-4)
    assert jnp.allclose(attn1, ref_attn1, atol=1e-4, rtol=1e-4)

    # ---- Test 2: (8,128)-aligned tiles + int8-mask sublane path -----------
    B2, H2, Lq2, Lk2, Dk2, Dv2 = 1, 2, 256, 256, 64, 64
    temperature2 = float(Dk2) ** 0.5
    q2 = jax.random.normal(kq2, (B2, H2, Lq2, Dk2), dtype=jnp.float32)
    k2 = jax.random.normal(kk2, (B2, H2, Lk2, Dk2), dtype=jnp.float32)
    v2 = jax.random.normal(kv2, (B2, H2, Lk2, Dv2), dtype=jnp.float32)
    mask2 = (jax.random.uniform(km2, (B2, 1, Lq2, Lk2)) > 0.2).astype(jnp.int8)

    out2, attn2 = scaled_dot_product_attention(q2, k2, v2, temperature2,
                                               mask=mask2)
    out2, attn2 = jax.block_until_ready((out2, attn2))
    ref_out2, ref_attn2 = _reference(q2, k2, v2, temperature2, mask=mask2)
    # Loose tolerance: both paths use TPU reduced-precision f32 matmul passes.
    assert jnp.allclose(out2, ref_out2, atol=2e-2, rtol=2e-2)
    assert jnp.allclose(attn2, ref_attn2, atol=2e-2, rtol=2e-2)

    print("KERNEL_OK")
</pallas_src>

<mosaic_0001>
module attributes {stable_mosaic.version = 11 : i64} {
  func.func @_sdpa_kernel_nomask(%arg0: i32, %arg1: i32, %arg2: memref<1x8x32xf32, #tpu.memory_space<vmem>>, %arg3: memref<1x8x32xf32, #tpu.memory_space<vmem>>, %arg4: memref<1x8x32xf32, #tpu.memory_space<vmem>>, %arg5: memref<1x8x32xf32, #tpu.memory_space<vmem>>, %arg6: memref<1x8x8xf32, #tpu.memory_space<vmem>>) attributes {dimension_semantics = [#tpu.dimension_semantics<parallel>, #tpu.dimension_semantics<arbitrary>], iteration_bounds = array<i64: 4, 1>, scalar_prefetch = 0 : i64, scratch_operands = 0 : i64, tpu.core_type = #tpu.core_type<tc>, window_params = [{transform_indices = @transform_0, window_bounds = array<i64: 1, 8, 32>}, {transform_indices = @transform_1, window_bounds = array<i64: 1, 8, 32>}, {transform_indices = @transform_2, window_bounds = array<i64: 1, 8, 32>}, {transform_indices = @transform_3, window_bounds = array<i64: 1, 8, 32>}, {transform_indices = @transform_4, window_bounds = array<i64: 1, 8, 8>}]} {
    %c0 = arith.constant 0 : index
    %c0_0 = arith.constant 0 : index
    %c0_1 = arith.constant 0 : index
    %0 = vector.load %arg2[%c0, %c0_0, %c0_1] : memref<1x8x32xf32, #tpu.memory_space<vmem>>, vector<1x8x32xf32>
    %1 = vector.shape_cast %0 : vector<1x8x32xf32> to vector<8x32xf32>
    %c0_2 = arith.constant 0 : index
    %c0_3 = arith.constant 0 : index
    %c0_4 = arith.constant 0 : index
    %2 = vector.load %arg3[%c0_2, %c0_3, %c0_4] : memref<1x8x32xf32, #tpu.memory_space<vmem>>, vector<1x8x32xf32>
    %3 = vector.shape_cast %2 : vector<1x8x32xf32> to vector<8x32xf32>
    %c0_5 = arith.constant 0 : index
    %c0_6 = arith.constant 0 : index
    %c0_7 = arith.constant 0 : index
    %4 = vector.load %arg4[%c0_5, %c0_6, %c0_7] : memref<1x8x32xf32, #tpu.memory_space<vmem>>, vector<1x8x32xf32>
    %5 = vector.shape_cast %4 : vector<1x8x32xf32> to vector<8x32xf32>
    %cst = arith.constant dense<0.000000e+00> : vector<8x8xf32>
    %6 = tpu.matmul %1, %3, %cst {dimension_numbers = #tpu.dot_dimension_numbers<[1], [1], [0], [0], [0, 0, 1, 0], [], []>} : vector<8x32xf32>, vector<8x32xf32>, vector<8x8xf32> -> vector<8x8xf32>
    %cst_8 = arith.constant 0.176776692 : f32
    %7 = vector.broadcast %cst_8 : f32 to vector<8x8xf32>
    %8 = arith.mulf %6, %7 : vector<8x8xf32>
    %cst_9 = arith.constant dense<0xFF800000> : vector<8xf32>
    %9 = vector.multi_reduction <maximumf>, %8, %cst_9 [1] : vector<8x8xf32> to vector<8xf32>
    %10 = vector.shape_cast %9 : vector<8xf32> to vector<8x1xf32>
    %11 = vector.broadcast %10 : vector<8x1xf32> to vector<8x8xf32>
    %12 = arith.subf %8, %11 : vector<8x8xf32>
    %13 = math.exp %12 : vector<8x8xf32>
    %cst_10 = arith.constant dense<0.000000e+00> : vector<8xf32>
    %14 = vector.multi_reduction <add>, %13, %cst_10 [1] : vector<8x8xf32> to vector<8xf32>
    %15 = vector.shape_cast %14 : vector<8xf32> to vector<8x1xf32>
    %16 = tpu.reciprocal %15 {approx = true} : vector<8x1xf32> -> vector<8x1xf32>
    %17 = arith.mulf %15, %16 : vector<8x1xf32>
    %cst_11 = arith.constant 2.000000e+00 : f32
    %18 = vector.broadcast %cst_11 : f32 to vector<8x1xf32>
    %19 = arith.subf %18, %17 : vector<8x1xf32>
    %20 = arith.mulf %16, %19 : vector<8x1xf32>
    %21 = vector.broadcast %20 : vector<8x1xf32> to vector<8x8xf32>
    %22 = arith.mulf %13, %21 : vector<8x8xf32>
    %c0_12 = arith.constant 0 : index
    %c0_13 = arith.constant 0 : index
    %c0_14 = arith.constant 0 : index
    %23 = vector.load %arg6[%c0_12, %c0_13, %c0_14] : memref<1x8x8xf32, #tpu.memory_space<vmem>>, vector<1x8x8xf32>
    %24 = vector.shape_cast %23 : vector<1x8x8xf32> to vector<8x8xf32>
    %25 = vector.shape_cast %22 : vector<8x8xf32> to vector<1x8x8xf32>
    tpu.vector_store %arg6[%c0_12, %c0_13, %c0_14], %25 {strides = array<i32>} : memref<1x8x8xf32, #tpu.memory_space<vmem>>, vector<1x8x8xf32>,
    %cst_15 = arith.constant dense<0.000000e+00> : vector<8x32xf32>
    %26 = tpu.matmul %22, %5, %cst_15 {dimension_numbers = #tpu.dot_dimension_numbers<[1], [0], [0], [1], [0, 0, 1, 1], [], []>} : vector<8x8xf32>, vector<8x32xf32>, vector<8x32xf32> -> vector<8x32xf32>
    %c0_16 = arith.constant 0 : index
    %c0_17 = arith.constant 0 : index
    %c0_18 = arith.constant 0 : index
    %27 = vector.load %arg5[%c0_16, %c0_17, %c0_18] : memref<1x8x32xf32, #tpu.memory_space<vmem>>, vector<1x8x32xf32>
    %28 = vector.shape_cast %27 : vector<1x8x32xf32> to vector<8x32xf32>
    %29 = vector.shape_cast %26 : vector<8x32xf32> to vector<1x8x32xf32>
    tpu.vector_store %arg5[%c0_16, %c0_17, %c0_18], %29 {strides = array<i32>} : memref<1x8x32xf32, #tpu.memory_space<vmem>>, vector<1x8x32xf32>,
    return
  }
  func.func @transform_0(%arg0: i32, %arg1: i32) -> (i32, i32, i32) {
    %c0_i32 = arith.constant 0 : i32
    %c0_i32_0 = arith.constant 0 : i32
    return %arg0, %arg1, %c0_i32 : i32, i32, i32
  }
  func.func @transform_1(%arg0: i32, %arg1: i32) -> (i32, i32, i32) {
    %c0_i32 = arith.constant 0 : i32
    %c0_i32_0 = arith.constant 0 : i32
    %c0_i32_1 = arith.constant 0 : i32
    return %arg0, %c0_i32, %c0_i32_0 : i32, i32, i32
  }
  func.func @transform_2(%arg0: i32, %arg1: i32) -> (i32, i32, i32) {
    %c0_i32 = arith.constant 0 : i32
    %c0_i32_0 = arith.constant 0 : i32
    %c0_i32_1 = arith.constant 0 : i32
    return %arg0, %c0_i32, %c0_i32_0 : i32, i32, i32
  }
  func.func @transform_3(%arg0: i32, %arg1: i32) -> (i32, i32, i32) {
    %c0_i32 = arith.constant 0 : i32
    %c0_i32_0 = arith.constant 0 : i32
    return %arg0, %arg1, %c0_i32 : i32, i32, i32
  }
  func.func @transform_4(%arg0: i32, %arg1: i32) -> (i32, i32, i32) {
    %c0_i32 = arith.constant 0 : i32
    %c0_i32_0 = arith.constant 0 : i32
    return %arg0, %arg1, %c0_i32 : i32, i32, i32
  }
}

</mosaic_0001>

<bundles_post_ra>
// kernel: tpu_custom_call.1
= control target key start
LH: loop header
LB: loop body
LE: loop exit
PB: predicated region body
PF: predicated region fallthrough
CT: control target
= control target key end

     0   :  { %s1336_s0 = inlined_call_operand.hbm [shape: f32[4,8,32], index: 0, kind: input, shape index: {}]   ;;  %s1337_s1 = inlined_call_operand.hbm [shape: f32[4,8,32], index: 1, kind: input, shape index: {}]   ;;  %s1338_s2 = inlined_call_operand.hbm [shape: f32[4,8,32], index: 2, kind: input, shape index: {}]   ;;  %s1339_s3 = inlined_call_operand.hbm [shape: f32[4,8,32], index: 3, kind: output, shape index: {0}]   ;;  %s1340_s4 = inlined_call_operand.hbm [shape: f32[4,8,8], index: 4, kind: output, shape index: {1}]  }
   0x1   :  { %1348 = sst [smem:[#allocation19_spill]] %s1337_s1 }
   0x2   :  { %10 = vsyncpa [#allocation3], 0 }
   0x3   :  { %12 = vsyncpa [#allocation3 + $0x1], 0 }
   0x4   :  { %13 = vsyncpa [#allocation6], 0 }
   0x5   :  { %15 = vsyncpa [#allocation6 + $0x1], 0 }
   0x6   :  { %16 = vsyncpa [#allocation4], 0 }
   0x7   :  { %18 = vsyncpa [#allocation4 + $0x1], 0 }
   0x8   :  { %19 = vsyncpa [#allocation10], 0 }
   0x9   :  { %21 = vsyncpa [#allocation10 + $0x1], 0  ;;  %s1039_s15 = smov 0   ;;  %s1041_s16 = smov 0  }
   0xa   :  { %s1043_s17 = smov 0   ;;  %s1045_s18 = smov 0  }
   0xb   :  { %s1047_s19 = smov 0   ;;  %s1049_s20 = smov 0  }
   0xc LB: > { %1349 = sst [smem:[#allocation15_spill]] %s1001_s19  ;;  %s1070_s21 = sadd.s32 4294967295, %s1005_s20   ;;  %s1005_s20 = sphi %s1049_s20, %s27_s20   ;;  %s1001_s19 = sphi %s1047_s19, %s1372_s19   ;;  %s997_s18 = sphi %s1045_s18, %s1371_s18   ;;  %s993_s17 = sphi %s1043_s17, %s1375_s17   ;;  %s989_s16 = sphi %s1041_s16, %s1374_s16   ;;  %s985_s15 = sphi %s1039_s15, %s1373_s15  }
   0xd   : > { %s676_s22 = sadd.s32 4294967294, %s1005_s20   ;;  %s39_s23 = sadd.s32 1, %s1001_s19 }
   0xe   : > { %s48_s24 = sadd.s32 1, %s993_s17  ;;  %p41_p0 = scmp.ge.s32.totalorder %s39_s23, 4 }
   0xf   : > { %p55_p1 = scmp.ne.s32.totalorder %s993_s17, %s989_s16  ;;  %p56_p2 = scmp.eq.s32.totalorder %s1005_s20, 0 }
  0x10   : > { %p61_p3 = scmp.ne.s32.totalorder %s989_s16, %s985_s15  ;;  %s1377_s23 = smov (%p41_p0, %s39_s23), 0 }
  0x11   : > { %1350 = sst [smem:[#allocation16_spill]] %s1377_s23  ;;  %p1082_p4 = por %p56_p2, %p55_p1 }
  0x12   : > { %p62_p5 = scmp.eq.s32.totalorder %s1070_s21, 0  ;;  %s43_s26 = ssub.s32 %s1001_s19, %s1377_s23 }
  0x13   : > { %p139_p6 = scmp.eq.s32.totalorder %s1070_s21, 3  ;;  %p46_p7 = scmp.eq.s32.totalorder %s43_s26, 0 }
  0x14   : > { %p1090_p8 = por %p62_p5, %p61_p3  ;;  %p145_p10 = scmp.eq.s32.totalorder %s676_s22, 3 }
  0x15   : > { %p1094_p9 = por %p139_p6, %p55_p1  ;;  %p741_p12 = scmp.lt.s32.totalorder %s1005_s20, 4 }
  0x16   : > { %s1352_s27 = scalar_select %p1090_p8, 1, 0 }
  0x17   : > { %s1353_s28 = scalar_select %p1094_p9, 1, 0 }
  0x18   : > { %s1099_s29 = scalar_select %p46_p7, %s993_s17, %s48_s24  }
  0x19   : > { %p1101_p11 = por %p145_p10, %p61_p3  ;;  %s1341_s5 = sand.u32 1, %s993_s17  }
  0x1a   : > { %1354 = sst [smem:[#allocation17_spill]] %s1099_s29  ;;  %s1109_s6 = sshll.u32 %s1341_s5, 3 }
  0x1b   : > { %s1355_s30 = scalar_select %p1101_p11, 1, 0 }
  0x1c   : > { %s1112_s7 = sshll.u32 %s1001_s19, 7  ;;  %p1116_p13 = pnand %p741_p12, %p1082_p4 }
  0x1d   : > { %1356 = sst [smem:[#allocation18_spill]] %s1355_s30  ;;  %s212_s9 = sand.u32 1, %s1005_s20  }
  0x1e   : > { %s1357_s8 = scalar_select %p1116_p13, 1, 0 }
  0x1f   : > { %s1358_s1 = sld [smem:[#allocation19_spill]]  ;;  %s216_s13 = scalar_lea.vmem [#allocation5], %s1109_s6 }
  0x20   : > { %s223_s14 = sshll.u32 %s216_s13, 4  ;;  %s1132_s22 = scalar_lea.sflag [#allocation6], %s212_s9  ;;  %s1129_s14 = int_to_ptr.vmem [resolvable:$true] %s223_s14 }
  0x21   : > { %p1138_p3 = pneg %p1116_p13 }
  0x25   : > { %s1125_s12 = scalar_lea.hbm %s1358_s1, %s1112_s7  ;;  %s802_s11 = scalar_lea.hbm %s1358_s1, 512 }
  0x26   : > { %s797_s24 = scalar_lea.hbm %s1125_s12, 128  ;;  %p803_p6 = scmp.lt.u32.totalorder %s1125_s12, %s1358_s1 }
  0x27   : > { %p798_p2 = scmp.ne.s32.totalorder %s1125_s12, %s797_s24  ;;  %p804_p7 = scmp.lt.u32.totalorder %s802_s11, %s797_s24 }
  0x28   : > { %p806_p12 = scmp.lt.u32.totalorder %s797_s24, %s1125_s12 }
  0x29   : > { %p800_p4 = pnand %p1138_p3, %p798_p2  ;;  %p805_p10 = por %p804_p7, %p803_p6 }
  0x2b   : > { %p801_p5 = pneg %p800_p4  ;;  %p807_p0 = por %p806_p12, %p805_p10 }
  0x2d   : > { %p808_p1 = pnand %p807_p0, %p801_p5 }
  0x2f   : > { %811 = shalt.err (!%p808_p1)
}
  0x30   : > { %s812_s9 = scalar_lea.vmem %s1129_s14, 128  ;;  %s1007_s26 = smov [#allocation5]  }
  0x31   : > { %p813_p2 = scmp.ne.s32.totalorder %s1129_s14, %s812_s9  ;;  %s817_s10 = sshll.u32 %s1007_s26, 4  ;;  %s818_s10 = int_to_ptr.vmem [resolvable:$false] %s817_s10 }
  0x32   : > { %s819_s5 = scalar_lea.vmem %s818_s10, 256  ;;  %p820_p9 = scmp.lt.s32.totalorder %s1129_s14, %s818_s10 }
  0x33   : > { %p815_p4 = pnand %p813_p2, %p1138_p3  ;;  %p821_p8 = scmp.lt.s32.totalorder %s819_s5, %s812_s9 }
  0x35   : > { %p816_p11 = pneg %p815_p4  ;;  %p822_p6 = por %p821_p8, %p820_p9 }
  0x37   : > { %p823_p7 = pnand %p822_p6, %p816_p11 }
  0x39   : > { %826 = shalt.err (!%p823_p7)
}
  0x3a   : > { %730 = dma.hbm_to_vmem [thread:$0]  (!%p1116_p13), %s1125_s12, 128, %s1129_s14, %s1132_s22  }
  0x3b   : > { %p1360_p0 = scmp.lt.s32.totalorder %s1005_s20, 5  ;;  %p1361_p1 = scmp.ge.s32.totalorder %s1005_s20, 1 }
  0x3c   : > { %s1174_s9 = scalar_lea.hbm %s1336_s0, %s1112_s7  ;;  %s197_s26 = scalar_lea.vmem [#allocation2], %s1109_s6 }
  0x3d   : > { %p1166_p5 = pnand %p1361_p1, %p1360_p0  ;;  %s205_s10 = sshll.u32 %s197_s26, 4  ;;  %s1177_s10 = int_to_ptr.vmem [resolvable:$true] %s205_s10 }
  0x3e   : > { %s1183_s5 = scalar_lea.hbm %s1338_s2, %s1112_s7  ;;  %s1363_s1 = sand.u32 1, %s993_s17  }
  0x3f   : > { %s1362_s24 = scalar_select %p1166_p5, 1, 0 }
  0x40   : > { %s194_s23 = scalar_lea.sflag [#allocation3], %s1363_s1  ;;  %s827_s19 = scalar_lea.hbm %s1174_s9, 128 }
  0x41   : > { %p828_p8 = scmp.ne.s32.totalorder %s1174_s9, %s827_s19  ;;  %s832_s29 = scalar_lea.hbm %s1336_s0, 512 }
  0x42   : > { %p833_p10 = scmp.lt.u32.totalorder %s1174_s9, %s1336_s0  ;;  %p834_p12 = scmp.lt.u32.totalorder %s832_s29, %s827_s19 }
  0x43   : > { %p830_p9 = pnand %p828_p8, %p1138_p3  ;;  %p836_p4 = scmp.lt.u32.totalorder %s827_s19, %s1174_s9 }
  0x44   : > { %p835_p2 = por %p834_p12, %p833_p10 }
  0x45   : > { %p831_p11 = pneg %p830_p9 }
  0x46   : > { %p837_p6 = por %p836_p4, %p835_p2 }
  0x48   : > { %p838_p7 = pnand %p837_p6, %p831_p11 }
  0x4a   : > { %841 = shalt.err (!%p838_p7)
}
  0x4b   : > { %s842_s1 = scalar_lea.vmem %s1177_s10, 128  ;;  %s1008_s7 = smov [#allocation2]  }
  0x4c   : > { %p843_p0 = scmp.ne.s32.totalorder %s1177_s10, %s842_s1  ;;  %s847_s12 = sshll.u32 %s1008_s7, 4  ;;  %s848_s12 = int_to_ptr.vmem [resolvable:$false] %s847_s12 }
  0x4d   : > { %s849_s30 = scalar_lea.vmem %s848_s12, 256  ;;  %p850_p9 = scmp.lt.s32.totalorder %s1177_s10, %s848_s12 }
  0x4e   : > { %p845_p1 = pnand %p843_p0, %p1138_p3  ;;  %p851_p5 = scmp.lt.s32.totalorder %s849_s30, %s842_s1 }
  0x50   : > { %p846_p8 = pneg %p845_p1  ;;  %p852_p10 = por %p851_p5, %p850_p9 }
  0x52   : > { %p853_p12 = pnand %p852_p10, %p846_p8 }
  0x54   : > { %856 = shalt.err (!%p853_p12)
}
  0x55   : > { %727 = dma.hbm_to_vmem [thread:$0]  (!%p1116_p13), %s1174_s9, 128, %s1177_s10, %s194_s23  }
  0x56   : > { %s234_s19 = scalar_lea.vmem [#allocation7], %s1109_s6  ;;  %s857_s14 = scalar_lea.hbm %s1183_s5, 128 }
  0x57   : > { %s241_s29 = sshll.u32 %s234_s19, 4  ;;  %p858_p11 = scmp.ne.s32.totalorder %s1183_s5, %s857_s14  ;;  %s242_s29 = int_to_ptr.vmem [resolvable:$true] %s241_s29 }
  0x58   : > { %s862_s26 = scalar_lea.hbm %s1338_s2, 512  ;;  %p863_p4 = scmp.lt.u32.totalorder %s1183_s5, %s1338_s2 }
  0x59   : > { %p860_p5 = pnand %p858_p11, %p1138_p3  ;;  %p864_p6 = scmp.lt.u32.totalorder %s862_s26, %s857_s14 }
  0x5a   : > { %p866_p0 = scmp.lt.u32.totalorder %s857_s14, %s1183_s5 }
  0x5b   : > { %p861_p2 = pneg %p860_p5  ;;  %p865_p7 = por %p864_p6, %p863_p4 }
  0x5d   : > { %p867_p1 = por %p866_p0, %p865_p7 }
  0x5f   : > { %p868_p8 = pnand %p867_p1, %p861_p2 }
  0x61   : > { %871 = shalt.err (!%p868_p8)
}
  0x62   : > { %s872_s23 = scalar_lea.vmem %s242_s29, 128  ;;  %s1009_s6 = smov [#allocation7]  }
  0x63   : > { %p873_p9 = scmp.ne.s32.totalorder %s242_s29, %s872_s23  ;;  %s877_s9 = sshll.u32 %s1009_s6, 4  ;;  %s878_s9 = int_to_ptr.vmem [resolvable:$false] %s877_s9 }
  0x64   : > { %s879_s10 = scalar_lea.vmem %s878_s9, 256  ;;  %p880_p11 = scmp.lt.s32.totalorder %s242_s29, %s878_s9 }
  0x65   : > { %p875_p10 = pnand %p873_p9, %p1138_p3  ;;  %p881_p5 = scmp.lt.s32.totalorder %s879_s10, %s872_s23 }
  0x67   : > { %p876_p12 = pneg %p875_p10  ;;  %p882_p13 = por %p881_p5, %p880_p11 }
  0x69   : > { %p883_p4 = pnand %p882_p13, %p876_p12 }
  0x6b   : > { %886 = shalt.err (!%p883_p4)
}
  0x6c   : > { %p1364_p6 = scmp.ne.s32.totalorder %s1357_s8, 0  ;;  %p1365_p2 = scmp.ne.s32.totalorder %s1362_s24, 0 }
  0x6d   : > { %s1230_s25 = sand.u32 (!%p1365_p2), 1, %s989_s16   ;;  %p1366_p13 = scmp.ne.s32.totalorder (!%p1365_p2), %s1352_s27, 0 }
  0x6e   : > { %733 = dma.hbm_to_vmem [thread:$0]  (!%p1364_p6), %s1183_s5, 128, %s242_s29, %s1132_s22  }
  0x6f   : > { %250 = sbr.rel (%p1365_p2) target bundleno = 888 (0x378), region = 32  ;;  %s1233_s12 = sshll.u32 (!%p1365_p2), %s1230_s25, 3 }
  0x70   : > { %s253_s30 = scalar_lea.sflag (!%p1365_p2), [#allocation3], %s1230_s25  ;;  %s256_s19 = scalar_lea.vmem (!%p1365_p2), [#allocation2], %s1233_s12 }
  0x76   : > { %968 = dma.done.wait (%p1366_p13), %s253_s30, 128  }
  0x77   : > { %970 = vsyncadd (%p1366_p13), %s253_s30, 4294967168  ;;  %s261_s8 = sand.u32 1, %s1070_s21   ;;  %s265_s24 = scalar_lea.vmem [#allocation5], %s1233_s12 }
  0x78   : > { %s262_s22 = scalar_lea.sflag [#allocation6], %s261_s8 }
  0x79   : > { %972 = dma.done.wait (%p1366_p13), %s262_s22, 256  }
  0x7a   : > { %974 = vsyncadd (%p1366_p13), %s262_s22, 4294967040  ;;  %v1010_v0 = vmov 0.0   ;;  %vm1011_vm0 = vmmov 0   ;;  %vm317_vm1 = vcmask 261120   ;;  %v315_v1 = vld [vmem:[%s265_s24] sm:$0xff]  ;;  %v314_v2 = vld [vmem:[%s256_s19] sm:$0xff] }
  0x7b   : > { %704 = vmatprep.subr.mxu0 %v1010_v0  ;;  %706 = vmatprep.mubr.msk.f32.mxu0 %vm1011_vm0, %v1010_v0  ;;  %vm395_vm2 = vcmask 64512   ;;  %s274_s21 = scalar_lea.vmem [#allocation7], %s1233_s12  ;;  %s313_s27 = scalar_lea.vmem [#allocation9], %s1233_s12 }
  0x7c   : > { %709 = vmatprep.subr.mxu1 %v1010_v0  ;;  %711 = vmatprep.mubr.msk.f32.mxu1 %vm1011_vm0, %v1010_v0  ;;  %v316_v12 = vld [vmem:[%s274_s21] sm:$0xff]  ;;  %s696_s5 = sshll.u32 %s997_s18, 7  ;;  %s519_s13 = sshll.u32 %s313_s27, 4  ;;  %s520_s13 = int_to_ptr.vmem [resolvable:$true] %s519_s13 }
  0x7d   : > { %705 = vmatpush3.xpose.msk.msra.mxu0 %vm317_vm1, %v315_v1  ;;  %710 = vmatpush3.msra.mxu1 %v316_v12  ;;  %s1261_s11 = scalar_lea.hbm %s1340_s4, %s696_s5  ;;  %s491_s26 = scalar_lea.sflag [#allocation10], %s1230_s25 }
  0x7e   : > { %s887_s1 = scalar_lea.vmem %s520_s13, 128  ;;  %p1367_p7 = scmp.ne.s32.totalorder %s1353_s28, 0 }
  0x7f   : > { %p888_p3 = scmp.ne.s32.totalorder %s520_s13, %s887_s1  ;;  %s1012_s7 = smov [#allocation9]  }
  0x80   : > { %707 = vmatmul.mubr.msk.f32.vlgmr.msra.gmra.mrb[0].mxu0 %vm317_vm1, %v314_v2  ;;  %s891_s23 = sshll.u32 %s1012_s7, 4  ;;  %s892_s23 = int_to_ptr.vmem [resolvable:$false] %s891_s23 }
  0x81   : > { %p889_p0 = pnand %p888_p3, %p1367_p7  ;;  %s893_s6 = scalar_lea.vmem %s892_s23, 256 }
  0x82   : > { %p894_p8 = scmp.lt.s32.totalorder %s520_s13, %s892_s23  ;;  %p895_p9 = scmp.lt.s32.totalorder %s893_s6, %s887_s1 }
  0x83   : > { %p890_p1 = pneg %p889_p0 }
  0x84   : > { %p896_p10 = por %p895_p9, %p894_p8 }
  0x86   : > { %p897_p12 = pnand %p896_p10, %p890_p1 }
 0x153   : > { %v390_v3 = vpop.f32.mrb[0].mxu0 }
 0x154   : > { %v394_v4 = vmul.f32 0.17677669, %v390_v3  ;;  %v708_v5 = vpop.f32.mrb[1].mxu0 }
 0x156   : > { %v396_v6 = vsel %vm395_vm2, %v394_v4, -inf }
 0x157   : > { %397 = vmax.xlane.f32.xlu0 %v396_v6 }
 0x1e4   : > { %v398_v7 = vpop.xlane.xlu0 %397 }
 0x1e5   : > { %v399_v8 = vsub.f32 %v394_v4, %v398_v7 }
 0x1e7   : > { %v400_v9 = vmul.f32 1.442695, %v399_v8 }
 0x1e9   : > { %793 = vpow2.f32 %v400_v9 }
 0x1f3   : > { %v794_v10 = vpop.eup %793 }
 0x1f4   : > { %v402_v11 = vsel %vm395_vm2, %v794_v10, 0.0 }
 0x1f5   : > { %403 = vadd.xlane.f32.xlu0 %v402_v11 }
 0x282   : > { %v404_v13 = vpop.xlane.xlu0 %403 }
 0x283   : > { %795 = vrcp.f32 %v404_v13 }
 0x28d   : > { %v796_v14 = vpop.eup %795 }
 0x28e   : > { %v406_v15 = vmul.f32 %v796_v14, %v404_v13 }
 0x290   : > { %v407_v16 = vsub.f32 2.0, %v406_v15 }
 0x292   : > { %v408_v17 = vmul.f32 %v796_v14, %v407_v16 }
 0x294   : > { %v409_v18 = vmul.f32 %v794_v10, %v408_v17 }
 0x296   : > { %712 = vmatmul.mubr.msk.f32.vlgmr.msra.gmra.mrb[0].mxu1 %vm395_vm2, %v409_v18  ;;  %410 = vst.msk [vmem:[%s313_s27] sm:$0xff] %vm395_vm2, %v409_v18 }
 0x297   : > { %900 = shalt.err (!%p897_p12)
}
 0x298   : > { %s901_s9 = scalar_lea.hbm %s1261_s11, 128  ;;  %s905_s19 = scalar_lea.hbm %s1340_s4, 512 }
 0x299   : > { %p902_p11 = scmp.ne.s32.totalorder %s1261_s11, %s901_s9  ;;  %p906_p6 = scmp.lt.u32.totalorder %s1261_s11, %s1340_s4 }
 0x29a   : > { %p907_p2 = scmp.lt.u32.totalorder %s905_s19, %s901_s9  ;;  %p909_p3 = scmp.lt.u32.totalorder %s901_s9, %s1261_s11 }
 0x29b   : > { %p903_p5 = pnand %p902_p11, %p1367_p7 }
 0x29c   : > { %p908_p13 = por %p907_p2, %p906_p6 }
 0x29d   : > { %p904_p4 = pneg %p903_p5 }
 0x29e   : > { %p910_p0 = por %p909_p3, %p908_p13 }
 0x2a0   : > { %p911_p1 = pnand %p910_p0, %p904_p4 }
 0x2a2   : > { %914 = shalt.err (!%p911_p1)
}
 0x2a3   : > { %721 = dma.vmem_to_hbm [thread:$0]  (%p1367_p7), %s520_s13, 128, %s1261_s11, %s491_s26  }
 0x2a4   : > { %s306_s24 = scalar_lea.vmem [#allocation8], %s1233_s12  ;;  %s1287_s14 = scalar_lea.hbm %s1339_s3, %s696_s5 }
 0x2a5   : > { %s505_s21 = sshll.u32 %s306_s24, 4  ;;  %s486_s1 = scalar_lea.sflag [#allocation4], %s1230_s25  ;;  %s1289_s21 = int_to_ptr.vmem [resolvable:$true] %s505_s21 }
 0x2a6   : > { %s915_s7 = scalar_lea.vmem %s1289_s21, 128  ;;  %s1013_s18 = smov [#allocation8]  }
 0x2a7   : > { %p916_p8 = scmp.ne.s32.totalorder %s1289_s21, %s915_s7  ;;  %s919_s12 = sshll.u32 %s1013_s18, 4  ;;  %s920_s12 = int_to_ptr.vmem [resolvable:$false] %s919_s12 }
 0x2a8   : > { %s921_s5 = scalar_lea.vmem %s920_s12, 256  ;;  %p922_p12 = scmp.lt.s32.totalorder %s1289_s21, %s920_s12 }
 0x2a9   : > { %p917_p9 = pnand %p916_p8, %p1367_p7  ;;  %p923_p11 = scmp.lt.s32.totalorder %s921_s5, %s915_s7 }
 0x2ab   : > { %p918_p10 = pneg %p917_p9  ;;  %p924_p5 = por %p923_p11, %p922_p12 }
 0x2ad   : > { %p925_p4 = pnand %p924_p5, %p918_p10 }
 0x369   : > { %v480_v19 = vpop.f32.mrb[0].mxu1 }
 0x36a   : > { %484 = vst.msk [vmem:[%s306_s24] sm:$0xff] %vm317_vm1, %v480_v19  ;;  %v713_v20 = vpop.f32.mrb[1].mxu1 }
 0x36b   : > { %928 = shalt.err (!%p925_p4)
}
 0x36c   : > { %s929_s25 = scalar_lea.hbm %s1287_s14, 128  ;;  %s933_s26 = scalar_lea.hbm %s1339_s3, 512 }
 0x36d   : > { %p930_p6 = scmp.ne.s32.totalorder %s1287_s14, %s929_s25  ;;  %p934_p3 = scmp.lt.u32.totalorder %s1287_s14, %s1339_s3 }
 0x36e   : > { %p935_p0 = scmp.lt.u32.totalorder %s933_s26, %s929_s25  ;;  %p937_p8 = scmp.lt.u32.totalorder %s929_s25, %s1287_s14 }
 0x36f   : > { %p931_p2 = pnand %p930_p6, %p1367_p7 }
 0x370   : > { %p936_p1 = por %p935_p0, %p934_p3 }
 0x371   : > { %p932_p13 = pneg %p931_p2 }
 0x372   : > { %p938_p9 = por %p937_p8, %p936_p1 }
 0x374   : > { %p939_p10 = pnand %p938_p9, %p932_p13 }
 0x376   : > { %942 = shalt.err (!%p939_p10)
}
 0x377   : > { %720 = dma.vmem_to_hbm [thread:$0]  (%p1367_p7), %s1289_s21, 128, %s1287_s14, %s486_s1  }
 0x378 PF: > { %s1368_s9 = sld [smem:[#allocation18_spill]]  ;;  %p742_p12 = scmp.ge.s32.totalorder %s1005_s20, 2 }
 0x379   : > { %s531_s10 = sand.u32 1, %s985_s15  }
 0x37a   : > { %s532_s30 = scalar_lea.sflag [#allocation4], %s531_s10 }
 0x37e   : > { %p1369_p11 = scmp.ne.s32.totalorder %s1368_s9, 0 }
 0x380   : > { %p735_p5 = pnand %p742_p12, %p1369_p11 }
 0x382   : > { %976 = dma.done.wait (!%p735_p5), %s532_s30, 128  }
 0x383   : > { %978 = vsyncadd (!%p735_p5), %s532_s30, 4294967168  ;;  %s541_s19 = scalar_lea.sflag [#allocation10], %s531_s10 }
 0x384   : > { %980 = dma.done.wait (!%p735_p5), %s541_s19, 128  }
 0x385   : > { %982 = vsyncadd (!%p735_p5), %s541_s19, 4294967168  ;;  %s27_s20 = sadd.s32 1, %s1005_s20   ;;  %s1370_s28 = sld [smem:[#allocation17_spill]] }
 0x386   : > { %p24_p4 = scmp.ge.s32.totalorder %s27_s20, 6   ;;  %s1371_s18 = sld [smem:[#allocation15_spill]] }
 0x387   : > { %s1372_s19 = sld [smem:[#allocation16_spill]]  ;;  %s1373_s15 = smov %s989_s16 }
 0x388   : > { %s1374_s16 = smov %s993_s17  ;;  %26 = sbr.rel (!%p24_p4) target bundleno = 12 (0xc), region = 118 }
 0x38b   : > { %s1375_s17 = smov %s1370_s28 }
 0x38f   :  { %546 = vsyncpa [#allocation3], 1 }
 0x390   :  { %548 = vsyncpa [#allocation3 + $0x1], 1 }
 0x391   :  { %549 = vsyncpa [#allocation6], 1 }
 0x392   :  { %551 = vsyncpa [#allocation6 + $0x1], 1 }
 0x393   :  { %552 = vsyncpa [#allocation4], 1 }
 0x394   :  { %554 = vsyncpa [#allocation4 + $0x1], 1 }
 0x395   :  { %555 = vsyncpa [#allocation10], 1 }
 0x396   :  { %557 = vsyncpa [#allocation10 + $0x1], 1 }

</bundles_post_ra>
